<compile_context>
chip_gen: v7x
topology: tpu7x:2x2x1
jax: 0.10.0
libtpu: 0.0.40
codegen_flags: <defaults>
</compile_context>

<pallas_src>
import functools

import jax
import jax.numpy as jnp
from jax.experimental import pallas as pl
from jax.experimental.pallas import tpu as pltpu


def _ins_decoder_kernel(x_ref, wattn_ref, battn_ref, v_ref,
                        w1_ref, b1_ref, w2_ref, b2_ref,
                        attn_ref, y_ref, *,
                        apply_softmax, transpose_out, mxu_bf16):
    BB, T, H = x_ref.shape
    x = x_ref[...]                                   # (BB, T, H) f32

    def mxu(a, b):
        if mxu_bf16:
            a = a.astype(jnp.bfloat16)
            b = b.astype(jnp.bfloat16)
        return jnp.dot(a, b, preferred_element_type=jnp.float32)

    # fc_attn as one big MXU matmul with M = BB*T.  The reshapes are
    # relayout-free views: with T == 8 and H <= 128 the (BB, T, H) and
    # (BB*T, H) forms share the same (8,128)-tiled VMEM layout.
    x2 = x.reshape(BB * T, H)
    z2 = jnp.tanh(mxu(x2, wattn_ref[...]) + battn_ref[...])     # (BB*T, H)
    z = z2.reshape(BB, T, H)

    # scores[b, t] = sum_h z[b, t, h] * v[h]  -> directly in (BB, T) layout.
    v = v_ref[...].reshape(1, 1, H)
    s = jnp.sum(z * v, axis=-1)                      # (BB, T) f32

    # softmax over the sequence axis T
    m = jnp.max(s, axis=-1, keepdims=True)
    e = jnp.exp(s - m)
    attn = e / jnp.sum(e, axis=-1, keepdims=True)    # (BB, T)

    # context[b, h] = sum_t attn[b, t] * x[b, t, h]  (VPU multiply-reduce)
    ctx = jnp.sum(attn[:, :, None] * x, axis=1)      # (BB, H)

    # fc_layers: Dropout(id) -> Linear -> ReLU -> Dropout(id) -> Linear
    h = jnp.maximum(mxu(ctx, w1_ref[...]) + b1_ref[...], 0.0)   # (BB, D1)
    y = mxu(h, w2_ref[...]) + b2_ref[...]                       # (BB, D2)

    if apply_softmax:
        ym = jnp.max(y, axis=-1, keepdims=True)
        ye = jnp.exp(y - ym)
        y = ye / jnp.sum(ye, axis=-1, keepdims=True)

    if transpose_out:
        # Lane-dense stores: batch in the lane axis (BB is a multiple of 128
        # or the full batch), tiny T / D2 in the sublane axis.
        attn_ref[...] = attn.T.astype(attn_ref.dtype)            # (T, BB)
        y_ref[...] = y.T.astype(y_ref.dtype)                     # (D2, BB)
    else:
        attn_ref[...] = attn.astype(attn_ref.dtype)              # (BB, T)
        y_ref[...] = y.astype(y_ref.dtype)                       # (BB, D2)


def _round_up(x, m):
    return ((x + m - 1) // m) * m


def _choose_batch_tile(B, T, H):
    """Pick (BB, transpose_out) for the batch tiling.

    * Tile size scales with the per-row footprint (target ~2 MiB of x per
      tile, double-buffered -> ~4 MiB) up to 4096 rows.
    * For B >= 16 we always produce >= 2 grid steps so both v7x TensorCores
      get a tile (harmless ~0.35us extra on single-TC v5e/v6e).
    * transpose_out (lane-dense output stores) is only legal when BB is a
      multiple of 128 or equals the full batch.
    """
    row_bytes = 4 * T * H
    cap = (2 << 20) // max(row_bytes, 1)
    cap = max(128, min(4096, cap))
    cap -= cap % 128                                  # multiple of 128

    if B < 16:
        # Tiny batch: single tile; store layout irrelevant, keep row-major.
        return B, False
    if B <= 256:
        # Medium batch: split into >= 2 tiles (rows multiple of 8).  If the
        # tile happens to be a multiple of 128 we also get lane-dense stores.
        bb = _round_up(pl.cdiv(B, 2), 8)
        return bb, (bb % 128 == 0)
    # Large batch: big lane-dense tiles (multiple of 128 rows), bounded by the
    # VMEM budget, still >= 2 tiles for megacore.
    bb = min(cap, _round_up(pl.cdiv(B, 2), 128))
    return bb, True


def ins_decoder_forward(encoder_outputs, params, apply_softmax=False,
                        mxu_bf16=False):
    """encoder_outputs: (B, T, H) f32. params: dict of weights (see __main__)."""
    B, T, H = encoder_outputs.shape
    wattn_t = params["fc_attn_w"].T        # (H, H)   (in, out)
    battn = params["fc_attn_b"][None, :]   # (1, H)
    v = params["v"][None, :]               # (1, H)
    w1_t = params["fc1_w"].T               # (H, D1)
    b1 = params["fc1_b"][None, :]          # (1, D1)
    w2_t = params["fc2_w"].T               # (D1, D2)
    b2 = params["fc2_b"][None, :]          # (1, D2)
    D1 = w1_t.shape[1]
    D2 = w2_t.shape[1]

    BB, transpose_out = _choose_batch_tile(B, T, H)
    nb = pl.cdiv(B, BB)
    Bp = nb * BB            # outputs are allocated padded (tiny), input is NOT

    kernel = functools.partial(
        _ins_decoder_kernel,
        apply_softmax=apply_softmax,
        transpose_out=transpose_out,
        mxu_bf16=mxu_bf16,
    )

    weight_bytes = 4 * (wattn_t.size + battn.size + v.size +
                        w1_t.size + b1.size + w2_t.size + b2.size)
    # Weights have constant index maps -> DMA'd once, not once per grid step.
    cost = pl.CostEstimate(
        flops=int(B) * (2 * T * H * H + 4 * T * H + 2 * H * D1 + 2 * D1 * D2),
        transcendentals=int(B) * (T * H + T + (D2 if apply_softmax else 0)),
        bytes_accessed=int(4 * B * T * H + weight_bytes + 4 * B * (T + D2)),
    )

    if transpose_out:
        out_shape = (
            jax.ShapeDtypeStruct((T, Bp), jnp.float32),
            jax.ShapeDtypeStruct((D2, Bp), jnp.float32),
        )
        out_specs = [
            pl.BlockSpec((T, BB), lambda i: (0, i)),
            pl.BlockSpec((D2, BB), lambda i: (0, i)),
        ]
    else:
        out_shape = (
            jax.ShapeDtypeStruct((Bp, T), jnp.float32),
            jax.ShapeDtypeStruct((Bp, D2), jnp.float32),
        )
        out_specs = [
            pl.BlockSpec((BB, T), lambda i: (i, 0)),
            pl.BlockSpec((BB, D2), lambda i: (i, 0)),
        ]

    # Explicit VMEM budget: double-buffered x tile + f32 intermediates
    # (z2, attn*x broadcast, ...) + resident weights, with slack.  Stays well
    # under v7x's 64 MiB physical VMEM even at the largest BB.
    x_tile_bytes = 4 * BB * T * H
    vmem_limit = min(max(16 << 20, 8 * x_tile_bytes + 2 * weight_bytes + (4 << 20)),
                     48 << 20)

    attn_out, y_out = pl.pallas_call(
        kernel,
        out_shape=out_shape,
        grid_spec=pltpu.PrefetchScalarGridSpec(
            num_scalar_prefetch=0,
            grid=(nb,),
            in_specs=[
                pl.BlockSpec((BB, T, H), lambda i: (i, 0, 0)),   # x tile (edge-masked)
                pl.BlockSpec((H, H), lambda i: (0, 0)),          # fc_attn W^T
                pl.BlockSpec((1, H), lambda i: (0, 0)),          # fc_attn b
                pl.BlockSpec((1, H), lambda i: (0, 0)),          # v
                pl.BlockSpec((H, D1), lambda i: (0, 0)),         # fc1 W^T
                pl.BlockSpec((1, D1), lambda i: (0, 0)),         # fc1 b
                pl.BlockSpec((D1, D2), lambda i: (0, 0)),        # fc2 W^T
                pl.BlockSpec((1, D2), lambda i: (0, 0)),         # fc2 b
            ],
            out_specs=out_specs,
        ),
        compiler_params=pltpu.CompilerParams(
            dimension_semantics=("parallel",),
            vmem_limit_bytes=int(vmem_limit),
        ),
        cost_estimate=cost,
    )(encoder_outputs, wattn_t, battn, v, w1_t, b1, w2_t, b2)

    if transpose_out:
        attn_scores = attn_out[:, :B].T if Bp != B else attn_out.T
        y_pred = y_out[:, :B].T if Bp != B else y_out.T
    else:
        attn_scores = attn_out[:B] if Bp != B else attn_out
        y_pred = y_out[:B] if Bp != B else y_out
    return attn_scores, y_pred


def _reference_forward(x, params, apply_softmax=False):
    # Pure-JAX reference mirroring the PyTorch module (eval mode).
    hi = "highest"
    z = jnp.tanh(jnp.einsum("bth,oh->bto", x, params["fc_attn_w"], precision=hi)
                 + params["fc_attn_b"])
    scores = jnp.einsum("bto,o->bt", z, params["v"], precision=hi)
    attn = jax.nn.softmax(scores, axis=1)
    ctx = jnp.einsum("bth,bt->bh", x, attn, precision=hi)
    h = jax.nn.relu(jnp.einsum("bh,dh->bd", ctx, params["fc1_w"], precision=hi)
                    + params["fc1_b"])
    y = jnp.einsum("bd,od->bo", h, params["fc2_w"], precision=hi) + params["fc2_b"]
    if apply_softmax:
        y = jax.nn.softmax(y, axis=1)
    return attn, y


if __name__ == "__main__":
    T, H = 8, 32                # seq, rnn_hidden_dim
    D1, D2 = 64, 16             # hidden_dim, output_dim

    key = jax.random.PRNGKey(0)
    ks = jax.random.split(key, 8)

    params = {
        "fc_attn_w": jax.random.normal(ks[0], (H, H), jnp.float32) * 0.1,
        "fc_attn_b": jax.random.normal(ks[1], (H,), jnp.float32) * 0.1,
        "v": jax.random.uniform(ks[2], (H,), jnp.float32),
        "fc1_w": jax.random.normal(ks[3], (D1, H), jnp.float32) * 0.1,
        "fc1_b": jax.random.normal(ks[4], (D1,), jnp.float32) * 0.1,
        "fc2_w": jax.random.normal(ks[5], (D2, D1), jnp.float32) * 0.1,
        "fc2_b": jax.random.normal(ks[6], (D2,), jnp.float32) * 0.1,
    }

    # --- primary small-shape check (B=2): single tile path ------------------
    B = 2
    x = jax.random.normal(ks[7], (B, T, H), jnp.float32)

    attn, y = ins_decoder_forward(x, params, apply_softmax=False)
    jax.block_until_ready((attn, y))

    attn_ref, y_ref = _reference_forward(x, params, apply_softmax=False)
    assert attn.shape == (B, T) and y.shape == (B, D2)
    assert jnp.allclose(attn, attn_ref, atol=1e-5, rtol=1e-5)
    assert jnp.allclose(y, y_ref, atol=1e-5, rtol=1e-5)

    # Optional output softmax path.
    attn_s, y_s = ins_decoder_forward(x, params, apply_softmax=True)
    jax.block_until_ready((attn_s, y_s))
    attn_sr, y_sr = _reference_forward(x, params, apply_softmax=True)
    assert jnp.allclose(attn_s, attn_sr, atol=1e-5, rtol=1e-5)
    assert jnp.allclose(y_s, y_sr, atol=1e-5, rtol=1e-5)

    # --- multi-tile path with an uneven last tile (B=20, nb=2) --------------
    B2 = 20
    x2 = jax.random.normal(jax.random.PRNGKey(1), (B2, T, H), jnp.float32)
    a2, p2 = ins_decoder_forward(x2, params, apply_softmax=False)
    jax.block_until_ready((a2, p2))
    a2r, p2r = _reference_forward(x2, params, apply_softmax=False)
    assert a2.shape == (B2, T) and p2.shape == (B2, D2)
    assert jnp.allclose(a2, a2r, atol=1e-5, rtol=1e-5)
    assert jnp.allclose(p2, p2r, atol=1e-5, rtol=1e-5)

    # --- large-batch lane-dense (transposed-store) path (B=260, BB=256) -----
    B3 = 260
    x3 = jax.random.normal(jax.random.PRNGKey(2), (B3, T, H), jnp.float32)
    a3, p3 = ins_decoder_forward(x3, params, apply_softmax=False)
    jax.block_until_ready((a3, p3))
    a3r, p3r = _reference_forward(x3, params, apply_softmax=False)
    assert a3.shape == (B3, T) and p3.shape == (B3, D2)
    assert jnp.allclose(a3, a3r, atol=1e-5, rtol=1e-5)
    assert jnp.allclose(p3, p3r, atol=1e-5, rtol=1e-5)

    print("KERNEL_OK")
</pallas_src>

<mosaic_0001>
module attributes {stable_mosaic.version = 11 : i64} {
  func.func @_ins_decoder_kernel(%arg0: i32, %arg1: memref<2x8x32xf32, #tpu.memory_space<vmem>>, %arg2: memref<32x32xf32, #tpu.memory_space<vmem>>, %arg3: memref<1x32xf32, #tpu.memory_space<vmem>>, %arg4: memref<1x32xf32, #tpu.memory_space<vmem>>, %arg5: memref<32x64xf32, #tpu.memory_space<vmem>>, %arg6: memref<1x64xf32, #tpu.memory_space<vmem>>, %arg7: memref<64x16xf32, #tpu.memory_space<vmem>>, %arg8: memref<1x16xf32, #tpu.memory_space<vmem>>, %arg9: memref<2x8xf32, #tpu.memory_space<vmem>>, %arg10: memref<2x16xf32, #tpu.memory_space<vmem>>) attributes {dimension_semantics = [#tpu.dimension_semantics<parallel>], iteration_bounds = array<i64: 1>, scalar_prefetch = 0 : i64, scratch_operands = 0 : i64, tpu.core_type = #tpu.core_type<tc>, window_params = [{transform_indices = @transform_0, window_bounds = array<i64: 2, 8, 32>}, {pipeline_mode = #tpu.pipeline_mode<synchronous>, transform_indices = @transform_1, window_bounds = array<i64: 32, 32>}, {pipeline_mode = #tpu.pipeline_mode<synchronous>, transform_indices = @transform_2, window_bounds = array<i64: 1, 32>}, {pipeline_mode = #tpu.pipeline_mode<synchronous>, transform_indices = @transform_3, window_bounds = array<i64: 1, 32>}, {pipeline_mode = #tpu.pipeline_mode<synchronous>, transform_indices = @transform_4, window_bounds = array<i64: 32, 64>}, {pipeline_mode = #tpu.pipeline_mode<synchronous>, transform_indices = @transform_5, window_bounds = array<i64: 1, 64>}, {pipeline_mode = #tpu.pipeline_mode<synchronous>, transform_indices = @transform_6, window_bounds = array<i64: 64, 16>}, {pipeline_mode = #tpu.pipeline_mode<synchronous>, transform_indices = @transform_7, window_bounds = array<i64: 1, 16>}, {transform_indices = @transform_8, window_bounds = array<i64: 2, 8>}, {transform_indices = @transform_9, window_bounds = array<i64: 2, 16>}]} {
    %c0 = arith.constant 0 : index
    %c0_0 = arith.constant 0 : index
    %c0_1 = arith.constant 0 : index
    %0 = vector.load %arg1[%c0, %c0_0, %c0_1] : memref<2x8x32xf32, #tpu.memory_space<vmem>>, vector<2x8x32xf32>
    %1 = vector.shape_cast %0 : vector<2x8x32xf32> to vector<16x32xf32>
    %c0_2 = arith.constant 0 : index
    %c0_3 = arith.constant 0 : index
    %2 = vector.load %arg2[%c0_2, %c0_3] : memref<32x32xf32, #tpu.memory_space<vmem>>, vector<32x32xf32>
    %cst = arith.constant dense<0.000000e+00> : vector<16x32xf32>
    %3 = tpu.matmul %1, %2, %cst {dimension_numbers = #tpu.dot_dimension_numbers<[1], [0], [0], [1], [0, 0, 1, 1], [], []>} : vector<16x32xf32>, vector<32x32xf32>, vector<16x32xf32> -> vector<16x32xf32>
    %c0_4 = arith.constant 0 : index
    %c0_5 = arith.constant 0 : index
    %4 = vector.load %arg3[%c0_4, %c0_5] : memref<1x32xf32, #tpu.memory_space<vmem>>, vector<1x32xf32>
    %5 = vector.broadcast %4 : vector<1x32xf32> to vector<16x32xf32>
    %6 = arith.addf %3, %5 : vector<16x32xf32>
    %7 = math.tanh %6 : vector<16x32xf32>
    %8 = vector.shape_cast %7 : vector<16x32xf32> to vector<2x8x32xf32>
    %c0_6 = arith.constant 0 : index
    %c0_7 = arith.constant 0 : index
    %9 = vector.load %arg4[%c0_6, %c0_7] : memref<1x32xf32, #tpu.memory_space<vmem>>, vector<1x32xf32>
    %10 = vector.shape_cast %9 : vector<1x32xf32> to vector<1x1x32xf32>
    %11 = vector.broadcast %10 : vector<1x1x32xf32> to vector<2x8x32xf32>
    %12 = arith.mulf %8, %11 : vector<2x8x32xf32>
    %cst_8 = arith.constant dense<0.000000e+00> : vector<2x8xf32>
    %13 = vector.multi_reduction <add>, %12, %cst_8 [2] : vector<2x8x32xf32> to vector<2x8xf32>
    %cst_9 = arith.constant dense<0xFF800000> : vector<2xf32>
    %14 = vector.multi_reduction <maximumf>, %13, %cst_9 [1] : vector<2x8xf32> to vector<2xf32>
    %15 = vector.shape_cast %14 : vector<2xf32> to vector<2x1xf32>
    %16 = vector.broadcast %15 : vector<2x1xf32> to vector<2x8xf32>
    %17 = arith.subf %13, %16 : vector<2x8xf32>
    %18 = math.exp %17 : vector<2x8xf32>
    %cst_10 = arith.constant dense<0.000000e+00> : vector<2xf32>
    %19 = vector.multi_reduction <add>, %18, %cst_10 [1] : vector<2x8xf32> to vector<2xf32>
    %20 = vector.shape_cast %19 : vector<2xf32> to vector<2x1xf32>
    %21 = vector.broadcast %20 : vector<2x1xf32> to vector<2x8xf32>
    %22 = arith.divf %18, %21 : vector<2x8xf32>
    %23 = vector.shape_cast %22 : vector<2x8xf32> to vector<2x8x1xf32>
    %24 = vector.broadcast %23 : vector<2x8x1xf32> to vector<2x8x32xf32>
    %25 = arith.mulf %24, %0 : vector<2x8x32xf32>
    %cst_11 = arith.constant dense<0.000000e+00> : vector<2x32xf32>
    %26 = vector.multi_reduction <add>, %25, %cst_11 [1] : vector<2x8x32xf32> to vector<2x32xf32>
    %c0_12 = arith.constant 0 : index
    %c0_13 = arith.constant 0 : index
    %27 = vector.load %arg5[%c0_12, %c0_13] : memref<32x64xf32, #tpu.memory_space<vmem>>, vector<32x64xf32>
    %cst_14 = arith.constant dense<0.000000e+00> : vector<2x64xf32>
    %28 = tpu.matmul %26, %27, %cst_14 {dimension_numbers = #tpu.dot_dimension_numbers<[1], [0], [0], [1], [0, 0, 1, 1], [], []>} : vector<2x32xf32>, vector<32x64xf32>, vector<2x64xf32> -> vector<2x64xf32>
    %c0_15 = arith.constant 0 : index
    %c0_16 = arith.constant 0 : index
    %29 = vector.load %arg6[%c0_15, %c0_16] : memref<1x64xf32, #tpu.memory_space<vmem>>, vector<1x64xf32>
    %30 = vector.broadcast %29 : vector<1x64xf32> to vector<2x64xf32>
    %31 = arith.addf %28, %30 : vector<2x64xf32>
    %cst_17 = arith.constant 0.000000e+00 : f32
    %32 = vector.broadcast %cst_17 : f32 to vector<2x64xf32>
    %33 = arith.maximumf %31, %32 : vector<2x64xf32>
    %c0_18 = arith.constant 0 : index
    %c0_19 = arith.constant 0 : index
    %34 = vector.load %arg7[%c0_18, %c0_19] : memref<64x16xf32, #tpu.memory_space<vmem>>, vector<64x16xf32>
    %cst_20 = arith.constant dense<0.000000e+00> : vector<2x16xf32>
    %35 = tpu.matmul %33, %34, %cst_20 {dimension_numbers = #tpu.dot_dimension_numbers<[1], [0], [0], [1], [0, 0, 1, 1], [], []>} : vector<2x64xf32>, vector<64x16xf32>, vector<2x16xf32> -> vector<2x16xf32>
    %c0_21 = arith.constant 0 : index
    %c0_22 = arith.constant 0 : index
    %36 = vector.load %arg8[%c0_21, %c0_22] : memref<1x16xf32, #tpu.memory_space<vmem>>, vector<1x16xf32>
    %37 = vector.broadcast %36 : vector<1x16xf32> to vector<2x16xf32>
    %38 = arith.addf %35, %37 : vector<2x16xf32>
    %c0_23 = arith.constant 0 : index
    %c0_24 = arith.constant 0 : index
    %39 = vector.load %arg9[%c0_23, %c0_24] : memref<2x8xf32, #tpu.memory_space<vmem>>, vector<2x8xf32>
    tpu.vector_store %arg9[%c0_23, %c0_24], %22 {strides = array<i32>} : memref<2x8xf32, #tpu.memory_space<vmem>>, vector<2x8xf32>,
    %c0_25 = arith.constant 0 : index
    %c0_26 = arith.constant 0 : index
    %40 = vector.load %arg10[%c0_25, %c0_26] : memref<2x16xf32, #tpu.memory_space<vmem>>, vector<2x16xf32>
    tpu.vector_store %arg10[%c0_25, %c0_26], %38 {strides = array<i32>} : memref<2x16xf32, #tpu.memory_space<vmem>>, vector<2x16xf32>,
    return
  }
  func.func @transform_0(%arg0: i32) -> (i32, i32, i32) {
    %c0_i32 = arith.constant 0 : i32
    %c0_i32_0 = arith.constant 0 : i32
    %c0_i32_1 = arith.constant 0 : i32
    return %arg0, %c0_i32, %c0_i32_0 : i32, i32, i32
  }
  func.func @transform_1(%arg0: i32) -> (i32, i32) {
    %c0_i32 = arith.constant 0 : i32
    %c0_i32_0 = arith.constant 0 : i32
    %c0_i32_1 = arith.constant 0 : i32
    return %c0_i32, %c0_i32_0 : i32, i32
  }
  func.func @transform_2(%arg0: i32) -> (i32, i32) {
    %c0_i32 = arith.constant 0 : i32
    %c0_i32_0 = arith.constant 0 : i32
    %c0_i32_1 = arith.constant 0 : i32
    return %c0_i32, %c0_i32_0 : i32, i32
  }
  func.func @transform_3(%arg0: i32) -> (i32, i32) {
    %c0_i32 = arith.constant 0 : i32
    %c0_i32_0 = arith.constant 0 : i32
    %c0_i32_1 = arith.constant 0 : i32
    return %c0_i32, %c0_i32_0 : i32, i32
  }
  func.func @transform_4(%arg0: i32) -> (i32, i32) {
    %c0_i32 = arith.constant 0 : i32
    %c0_i32_0 = arith.constant 0 : i32
    %c0_i32_1 = arith.constant 0 : i32
    return %c0_i32, %c0_i32_0 : i32, i32
  }
  func.func @transform_5(%arg0: i32) -> (i32, i32) {
    %c0_i32 = arith.constant 0 : i32
    %c0_i32_0 = arith.constant 0 : i32
    %c0_i32_1 = arith.constant 0 : i32
    return %c0_i32, %c0_i32_0 : i32, i32
  }
  func.func @transform_6(%arg0: i32) -> (i32, i32) {
    %c0_i32 = arith.constant 0 : i32
    %c0_i32_0 = arith.constant 0 : i32
    %c0_i32_1 = arith.constant 0 : i32
    return %c0_i32, %c0_i32_0 : i32, i32
  }
  func.func @transform_7(%arg0: i32) -> (i32, i32) {
    %c0_i32 = arith.constant 0 : i32
    %c0_i32_0 = arith.constant 0 : i32
    %c0_i32_1 = arith.constant 0 : i32
    return %c0_i32, %c0_i32_0 : i32, i32
  }
  func.func @transform_8(%arg0: i32) -> (i32, i32) {
    %c0_i32 = arith.constant 0 : i32
    %c0_i32_0 = arith.constant 0 : i32
    return %arg0, %c0_i32 : i32, i32
  }
  func.func @transform_9(%arg0: i32) -> (i32, i32) {
    %c0_i32 = arith.constant 0 : i32
    %c0_i32_0 = arith.constant 0 : i32
    return %arg0, %c0_i32 : i32, i32
  }
}

</mosaic_0001>

<bundles_post_ra>
// kernel: tpu_custom_call.1
= control target key start
LH: loop header
LB: loop body
LE: loop exit
PB: predicated region body
PF: predicated region fallthrough
CT: control target
= control target key end

     0   :  { %15 = vsyncpa [#allocation3], 0  ;;  %vm46_vm0 = vcmask 261120   ;;  %s799_s0 = inlined_call_operand.vmem [shape: f32[2,8,32], index: 0, kind: input, shape index: {}]   ;;  %s800_s1 = inlined_call_operand.vmem [shape: f32[32,32], index: 1, kind: input, shape index: {}]   ;;  %s801_s2 = inlined_call_operand.vmem [shape: f32[1,32], index: 2, kind: input, shape index: {}]   ;;  %s802_s3 = inlined_call_operand.vmem [shape: f32[1,32], index: 3, kind: input, shape index: {}]   ;;  %s803_s4 = inlined_call_operand.vmem [shape: f32[32,64], index: 4, kind: input, shape index: {}]   ;;  %s804_s5 = inlined_call_operand.vmem [shape: f32[1,64], index: 5, kind: input, shape index: {}]   ;;  %s805_s6 = inlined_call_operand.vmem [shape: f32[64,16], index: 6, kind: input, shape index: {}]   ;;  %s806_s7 = inlined_call_operand.vmem [shape: f32[1,16], index: 7, kind: input, shape index: {}]   ;;  %s807_s8 = inlined_call_operand.hbm [shape: f32[2,8], index: 8, kind: output, shape index: {0}]   ;;  %s808_s9 = inlined_call_operand.hbm [shape: f32[2,16], index: 9, kind: output, shape index: {1}]  }
   0x1   :  { %v35_v0 = vld [vmem:[%s800_s1] sm:$0xff]  ;;  %v36_v1 = vld [vmem:[%s800_s1 + $0x8] sm:$0xff]  ;;  %v37_v2 = vld [vmem:[%s800_s1 + $0x10] sm:$0xff] }
   0x2   :  { %v529_v3 = vpack.c.bf16 %v36_v1, %v35_v0  ;;  %v38_v4 = vld [vmem:[%s800_s1 + $0x18] sm:$0xff]  ;;  %v694_v5 = vld [vmem:[%s799_s0] sm:$0xff] }
   0x3   :  { %v533_v6 = vpack.c.bf16 %v38_v4, %v37_v2  ;;  %496 = vmatprep.mubr.msk.f32.mxu1 %vm46_vm0, %v694_v5 }
   0x4   :  { %16 = vsyncpa [#allocation5], 0  ;;  %530 = vmatprep.subr.bf16.mxu1 %v529_v3  ;;  %v701_v7 = vld [vmem:[%s799_s0 + $0x8] sm:$0xff]  ;;  %v460_v8 = vld [vmem:[%s801_s2] ss:$0 sm:$0xff]  ;;  %v147_v20 = vlaneseq  ;;  %vm157_vm1 = vcmask 1041409  }
   0x5   :  { %532 = vmatpush3.bf16.msra.mxu1 %v529_v3  ;;  %v463_v13 = vld [vmem:[%s802_s3] ss:$0 sm:$0xff]  ;;  %vm160_vm2 = vcmask 58368   ;;  %v623_v30 = vmov 0   ;;  %v244_v56 = vld [vmem:[%s803_s4 + $0x8] sm:$0xff]  ;;  %v624_v58 = vmov 0.0|0.0  }
   0x6   :  { %534 = vmatprep.subr.bf16.mxu1 %v533_v6  ;;  %v148_v21 = vand.u32 127, %v147_v20  ;;  %v150_v22 = vshrl.u32 %v147_v20, 7  ;;  %562 = vset.pattern.permute.xlu0 %v623_v30  ;;  %v243_v55 = vld [vmem:[%s803_s4] sm:$0xff]  ;;  %v245_v59 = vld [vmem:[%s803_s4 + $0x10] sm:$0xff]  ;;  %v246_v60 = vld [vmem:[%s803_s4 + $0x18] sm:$0xff]  ;;  %vm625_vm3 = vmmov 0  }
   0x7   :  { %561 = vset.pattern.permute.xlu1 %v623_v30  ;;  %v538_v57 = vpack.c.bf16 %v244_v56, %v243_v55  ;;  %543 = vmatprep.subr.bf16.mxu0 %v624_v58  ;;  %v541_v61 = vpack.c.bf16 %v246_v60, %v245_v59  ;;  %v626_v62 = vmov 0.0   ;;  %v330_v63 = vld [vmem:[%s805_s6] sm:$0xff]  ;;  %v331_v0 = vld [vmem:[%s805_s6 + $0x8] sm:$0xff]  ;;  %v332_v1 = vld [vmem:[%s805_s6 + $0x10] sm:$0xff]  ;;  %vm345_vm4 = vcmask 523264   ;;  %s627_s0 = smov [#allocation2]  }
   0x8   :  { %v713_v24 = vsub.s32 %v148_v21, %v150_v22  ;;  %v167_v31 = vsub.s32 0, %v150_v22  ;;  %v171_v32 = vsub.s32 1, %v150_v22  ;;  %526 = vmatprep.mubr.msk.f32.mxu0 %vm625_vm3, %v626_v62  ;;  %v544_v2 = vpack.c.bf16 %v331_v0, %v330_v63  ;;  %v333_v3 = vld [vmem:[%s805_s6 + $0x18] sm:$0xff]  ;;  %s438_s2 = sshll.u32 %s627_s0, 4  ;;  %s439_s2 = int_to_ptr.vmem [resolvable:$true] %s438_s2 }
   0x9   :  { %536 = vmatpush3.bf16.msra.mxu1 %v533_v6  ;;  %v547_v4 = vpack.c.bf16 %v333_v3, %v332_v1  ;;  %v334_v6 = vld [vmem:[%s805_s6 + $0x20] sm:$0xff]  ;;  %s575_s3 = scalar_lea.vmem %s439_s2, 32  ;;  %p580_p1 = scmp.lt.s32.totalorder %s439_s2, %s439_s2 }
   0xa   :  { %537 = vmatprep.subr.bf16.mxu1 %v624_v58  ;;  %545 = vmatpush3.bf16.msra.mxu0 %v544_v2  ;;  %p576_p0 = scmp.ne.s32.totalorder %s439_s2, %s575_s3  ;;  %p581_p2 = scmp.lt.s32.totalorder %s575_s3, %s575_s3 }
   0xb   :  { %546 = vmatprep.subr.bf16.mxu0 %v624_v58 }
   0xc   :  { %497 = vmatmul.mubr.msk.f32.vlgmr.msra.gmra.mrb[0].mxu1 %vm46_vm0, %v701_v7  ;;  %p582_p3 = por %p581_p2, %p580_p1 }
   0xd   :  { %539 = vmatpush3.bf16.msra.mxu1 %v538_v57  ;;  %507 = vmatprep.mubr.msk.f32.mxu1 %vm625_vm3, %v626_v62 }
   0xe   :  { %540 = vmatprep.subr.bf16.mxu1 %v624_v58  ;;  %548 = vmatpush3.bf16.msra.mxu0 %v547_v4  ;;  %p583_p4 = pnand %p582_p3, %p576_p0 }
   0xf   :  { %549 = vmatprep.subr.bf16.mxu0 %v624_v58 }
  0x11   :  { %542 = vmatpush3.bf16.msra.mxu1 %v541_v61 }
  0xdf   :  { %v498_v9 = vpop.f32.mrb[0].mxu1 }
  0xe0   :  { %v125_v10 = vadd.f32 %v498_v9, %v460_v8  ;;  %v119_v11 = vpop.f32.mrb[1].mxu1 }
  0xe1   :  { %v120_v12 = vadd.f32 %v460_v8, %v119_v11  ;;  %v335_v8 = vld [vmem:[%s805_s6 + $0x28] sm:$0xff] }
  0xe2   :  { %563 = vtanh.f32 %v125_v10  ;;  %v550_v9 = vpack.c.bf16 %v335_v8, %v334_v6 }
  0xe3   :  { %565 = vtanh.f32 %v120_v12 }
  0xe4   :  { %551 = vmatpush3.bf16.msra.mxu0 %v550_v9 }
  0xe5   :  { %552 = vmatprep.subr.bf16.mxu0 %v624_v58 }
  0xec   :  { %v564_v14 = vpop.eup %563 }
  0xed   :  { %v566_v15 = vpop.eup %565  ;;  %v138_v18 = vmul.f32 %v564_v14, %v463_v13 }
  0xee   :  { %v137_v16 = vmul.f32 %v566_v15, %v463_v13 }
  0xef   :  { %v142_v19 = vsel %vm46_vm0, %v138_v18, 0.0 }
  0xf0   :  { %v139_v17 = vsel %vm46_vm0, %v137_v16, 0.0 }
  0xf1   :  { %140 = vadd.xlane.f32.xlu0 %v139_v17 }
  0xf5   :  { %143 = vadd.xlane.f32.xlu0 %v142_v19 }
 0x17e   :  { %v141_v23 = vpop.xlane.xlu0 %140 }
 0x17f   :  { %v152_v26 = vrot.slane %v141_v23, %v713_v24 }
 0x182   :  { %v144_v25 = vpop.xlane.xlu0 %143 }
 0x183   :  { %v156_v27 = vrot.slane %v144_v25, %v713_v24 }
 0x185   :  { %v158_v28 = vsel %vm157_vm1, %v156_v27, %v152_v26 }
 0x186   :  { %v161_v29 = vsel %vm160_vm2, %v158_v28, -inf }
 0x187   :  { %162 = vmax.xlane.f32.xlu1 %v161_v29 }
 0x214   :  { %v163_v33 = vpop.xlane.xlu1 %162 }
 0x215   :  { %v168_v34 = vrot.slane %v163_v33, %v167_v31  ;;  %v172_v35 = vrot.slane %v163_v33, %v171_v32  ;;  %v464_v33 = vld [vmem:[%s804_s5] ss:$0 sm:$0xff] }
 0x217   :  { %v175_v36 = vsub.f32 %v141_v23, %v168_v34  ;;  %v176_v37 = vsub.f32 %v144_v25, %v172_v35 }
 0x219   :  { %v177_v38 = vmul.f32 1.442695, %v175_v36  ;;  %v179_v39 = vmul.f32 1.442695, %v176_v37 }
 0x21b   :  { %567 = vpow2.f32 %v177_v38 }
 0x21c   :  { %569 = vpow2.f32 %v179_v39 }
 0x225   :  { %v568_v40 = vpop.eup %567 }
 0x226   :  { %v570_v41 = vpop.eup %569  ;;  %184 = vperm.xlu1 %561, %v568_v40  }
 0x227   :  { %187 = vperm.xlu0 %562, %v570_v41  }
 0x2a5   :  { %v185_v42 = vpop.permute.xlu1 %184 }
 0x2a6   :  { %v188_v43 = vpop.permute.xlu0 %187  ;;  %v192_v44 = vrot.slane %v185_v42, %v713_v24 }
 0x2a7   :  { %v196_v45 = vrot.slane %v188_v43, %v713_v24 }
 0x2a9   :  { %v197_v46 = vsel %vm157_vm1, %v196_v45, %v192_v44 }
 0x2aa   :  { %v199_v47 = vsel %vm160_vm2, %v197_v46, 0.0 }
 0x2ab   :  { %200 = vadd.xlane.f32.xlu1 %v199_v47 }
 0x338   :  { %v201_v48 = vpop.xlane.xlu1 %200 }
 0x339   :  { %v206_v49 = vrot.slane %v201_v48, %v167_v31  ;;  %v210_v50 = vrot.slane %v201_v48, %v171_v32  ;;  %v337_v31 = vld [vmem:[%s805_s6 + $0x38] sm:$0xff] }
 0x33b   :  { %571 = vrcp.f32 %v206_v49 }
 0x33c   :  { %573 = vrcp.f32 %v210_v50 }
 0x345   :  { %v572_v51 = vpop.eup %571 }
 0x346   :  { %v214_v52 = vmul.f32 %v572_v51, %v568_v40  ;;  %v574_v53 = vpop.eup %573 }
 0x347   :  { %v216_v54 = vmul.f32 %v574_v53, %v570_v41 }
 0x348   :  { %219 = vperm.xlu0 %562, %v214_v52  }
 0x34c   :  { %224 = vperm.xlu0 %562, %v216_v54  }
 0x3c7   :  { %v220_v10 = vpop.permute.xlu0 %219 }
 0x3c8   :  { %v227_v11 = vmul.f32 %v220_v10, %v694_v5  ;;  %v422_v15 = vrot.slane %v220_v10, %v713_v24 }
 0x3ca   :  { %v229_v12 = vsel %vm46_vm0, %v227_v11, 0.0 }
 0x3cb   :  { %v230_v13 = vrot.slane %v229_v12, 4  ;;  %v225_v14 = vpop.permute.xlu0 %224 }
 0x3cc   :  { %v228_v16 = vmul.f32 %v225_v14, %v701_v7  ;;  %v426_v17 = vrot.slane %v225_v14, %v713_v24  ;;  %v336_v24 = vld [vmem:[%s805_s6 + $0x30] sm:$0xff] }
 0x3cd   :  { %v231_v18 = vadd.f32 %v230_v13, %v229_v12  ;;  %v553_v32 = vpack.c.bf16 %v337_v31, %v336_v24 }
 0x3ce   :  { %v236_v19 = vsel %vm46_vm0, %v228_v16, 0.0  ;;  %v427_v20 = vsel %vm157_vm1, %v426_v17, %v422_v15 }
 0x3cf   :  { %v232_v21 = vrot.slane %v231_v18, 2  ;;  %v237_v22 = vrot.slane %v236_v19, 4  ;;  %429 = vst.msk [vmem:[#allocation2] sm:$0x3] %vm160_vm2, %v427_v20  ;;  %554 = vmatpush3.bf16.msra.mxu0 %v553_v32 }
 0x3d1   :  { %v233_v5 = vadd.f32 %v232_v21, %v231_v18  ;;  %v238_v23 = vadd.f32 %v237_v22, %v236_v19 }
 0x3d3   :  { %v239_v25 = vrot.slane %v238_v23, 2  ;;  %v234_v26 = vrot.slane %v233_v5, 1 }
 0x3d5   :  { %v240_v27 = vadd.f32 %v239_v25, %v238_v23  ;;  %v235_v29 = vadd.f32 %v234_v26, %v233_v5 }
 0x3d7   :  { %v241_v28 = vrot.slane %v240_v27, 1 }
 0x3d9   :  { %v242_v30 = vadd.f32 %v241_v28, %v240_v27 }
 0x3db   :  { %v256_v7 = vsel %vm157_vm1, %v242_v30, %v235_v29 }
 0x3dc   :  { %508 = vmatmul.mubr.msk.f32.vlgmr.msra.gmra.mrb[2].mxu1 %vm46_vm0, %v256_v7 }
 0x4af   :  { %v325_v34 = vpop.f32.mrb[2].mxu1 }
 0x4b0   :  { %v326_v35 = vadd.f32 %v464_v33, %v325_v34  ;;  %v509_v36 = vpop.f32.mrb[3].mxu1 }
 0x4b2   :  { %v329_v37 = vmax.f32 %v326_v35, 0.0 }
 0x4b4   :  { %527 = vmatmul.mubr.msk.f32.vlgmr.msra.gmra.mrb[0].mxu0 %vm345_vm4, %v329_v37 }
 0x4b5   :  { %586 = shalt.err (!%p583_p4)
}
 0x4b6   :  { %s587_s5 = scalar_lea.hbm %s807_s8, 32 }
 0x4b7   :  { %p588_p5 = scmp.ne.s32.totalorder %s807_s8, %s587_s5  ;;  %p591_p6 = scmp.lt.u32.totalorder %s587_s5, %s807_s8 }
 0x4b9   :  { %p593_p7 = pnand %p591_p6, %p588_p5 }
 0x4bb   :  { %596 = shalt.err (!%p593_p7)
}
 0x4bc   :  { %441 = dma.vmem_to_hbm [thread:$0]  %s439_s2, 32, %s807_s8, [#allocation3]   ;;  %v466_v38 = vld [vmem:[%s806_s7] ss:$0 sm:$0xff]  ;;  %vm430_vm5 = vcmask 123904  }
 0x4bd   :  { %s628_s12 = smov [#allocation4]  }
 0x4be   :  { %s448_s13 = sshll.u32 %s628_s12, 4  ;;  %s449_s13 = int_to_ptr.vmem [resolvable:$true] %s448_s13 }
 0x4bf   :  { %s597_s4 = scalar_lea.vmem %s449_s13, 32  ;;  %p602_p9 = scmp.lt.s32.totalorder %s449_s13, %s449_s13 }
 0x4c0   :  { %p598_p8 = scmp.ne.s32.totalorder %s449_s13, %s597_s4  ;;  %p603_p10 = scmp.lt.s32.totalorder %s597_s4, %s597_s4 }
 0x4c2   :  { %p604_p11 = por %p603_p10, %p602_p9 }
 0x4c4   :  { %p605_p12 = pnand %p604_p11, %p598_p8 }
 0x587   :  { %v415_v39 = vpop.f32.mrb[0].mxu0 }
 0x588   :  { %v416_v40 = vadd.f32 %v466_v38, %v415_v39  ;;  %v528_v41 = vpop.f32.mrb[1].mxu0 }
 0x58a   :  { %431 = vst.msk [vmem:[#allocation4] sm:$0x3] %vm430_vm5, %v416_v40 }
 0x58b   :  { %608 = shalt.err (!%p605_p12)
}
 0x58c   :  { %s609_s15 = scalar_lea.hbm %s808_s9, 32 }
 0x58d   :  { %p610_p13 = scmp.ne.s32.totalorder %s808_s9, %s609_s15  ;;  %p613_p0 = scmp.lt.u32.totalorder %s609_s15, %s808_s9 }
 0x58f   :  { %p615_p1 = pnand %p613_p0, %p610_p13 }
 0x591   :  { %618 = shalt.err (!%p615_p1)
}
 0x592   :  { %451 = dma.vmem_to_hbm [thread:$0]  %s449_s13, 32, %s808_s9, [#allocation5]  }
 0x593   :  { %619 = dma.done.wait [#allocation3], 32  }
 0x594   :  { %620 = vsyncadd [#allocation3], 4294967264 }
 0x595   :  { %621 = dma.done.wait [#allocation5], 32  }
 0x596   :  { %622 = vsyncadd [#allocation5], 4294967264 }
 0x597   :  { %458 = vsyncpa [#allocation3], 1 }
 0x598   :  { %459 = vsyncpa [#allocation5], 1 }

</bundles_post_ra>
